<compile_context>
chip_gen: v5e
topology: v5e:2x2
jax: 0.10.0
libtpu: 0.0.40
codegen_flags: <defaults>
</compile_context>

<pallas_src>
import functools

import jax
import jax.numpy as jnp
from jax.experimental import pallas as pl
from jax.experimental.pallas import tpu as pltpu

_TILE_BYTES = 4 << 20        # target per-tile footprint (4 MiB)
_SUBLANE = 32                # row rounding covering f32(8)/bf16(16)/int8(32) packing
_VMEM_LIMIT = 32 << 20       # 2x(in+out) 4 MiB tiles = 16 MiB, generous headroom
_DEFAULT_MIN_ELEMS = 1 << 18  # below this, plain JAX is faster than a kernel launch


def _round_up(x, m):
    return (x + m - 1) // m * m


def _lambda_scale_kernel(scale_ref, x_ref, o_ref):
    # scale_ref: (1, 1) f32 scalar in SMEM; x_ref/o_ref: (tm, n_lane) VMEM tiles.
    # Cast the scalar once to the tile dtype so bf16 tiles stay bf16 (no per-tile
    # f32 promote/demote VPU work) — no-op for f32.
    s = scale_ref[0, 0].astype(x_ref.dtype)
    o_ref[...] = x_ref[...] * s


def _pallas_scale_2d(x2d, scale2d, tm, n_lane):
    m = x2d.shape[0]
    grid = (pl.cdiv(m, tm),)
    itemsize = jnp.dtype(x2d.dtype).itemsize
    return pl.pallas_call(
        _lambda_scale_kernel,
        out_shape=jax.ShapeDtypeStruct((m, n_lane), x2d.dtype),
        grid_spec=pltpu.PrefetchScalarGridSpec(
            num_scalar_prefetch=0,
            grid=grid,
            in_specs=[
                pl.BlockSpec(memory_space=pltpu.SMEM),           # scalar scale
                pl.BlockSpec((tm, n_lane), lambda i: (i, 0)),    # x row-tile
            ],
            out_specs=pl.BlockSpec((tm, n_lane), lambda i: (i, 0)),
        ),
        compiler_params=pltpu.CompilerParams(
            dimension_semantics=("parallel",),
            vmem_limit_bytes=_VMEM_LIMIT,
        ),
        cost_estimate=pl.CostEstimate(
            flops=m * n_lane,
            transcendentals=0,
            bytes_accessed=2 * m * n_lane * itemsize,
        ),
    )(scale2d, x2d)


@functools.partial(jax.jit, static_argnames=("base", "min_pallas_elems"))
def lambda_layer(x, l, base=1, min_pallas_elems=_DEFAULT_MIN_ELEMS):
    """Elementwise scale: x * l (base==1) or x * base**l.

    x: any-shape float array (e.g. NCHW [B, C, H, W])
    l: scalar (float) -- the lambda parameter
    base: static python number
    min_pallas_elems: below this element count, use plain JAX (fused multiply).
    """
    # Effective scalar scale is scalar math, not the hot path.
    l = jnp.asarray(l, dtype=jnp.float32).reshape(())
    if base == 1:
        scale = l
    else:
        scale = jnp.asarray(base, dtype=jnp.float32) ** l

    total = x.size
    # Fast paths: tiny tensors (launch + per-step overhead dominates) and
    # element counts not divisible by 128 (no zero-copy lane-dense view;
    # pad+slice would add two extra full HBM passes, while XLA's fused
    # elementwise multiply is already at the HBM roofline).
    if total == 0 or total < min_pallas_elems or total % 128 != 0:
        return (x * scale.astype(x.dtype)).astype(x.dtype)

    # Zero-copy lane-dense 2-D view: widest of {512, 256, 128} dividing total.
    if total % 512 == 0:
        n_lane = 512
    elif total % 256 == 0:
        n_lane = 256
    else:
        n_lane = 128
    m = total // n_lane

    itemsize = jnp.dtype(x.dtype).itemsize
    rows_target = max(_SUBLANE, _TILE_BYTES // (n_lane * itemsize))
    # Aim for >= 4 row-blocks so both v7x TensorCores stream; round rows to 32
    # so every dtype (f32/bf16/int8) stays on the unmasked-store path.
    tm = min(rows_target, max(_SUBLANE, _round_up(pl.cdiv(m, 4), _SUBLANE)))
    if tm >= m:
        tm = m  # single full-extent block (full array dims are always legal)

    scale2d = scale.reshape(1, 1)
    x2d = x.reshape(m, n_lane)  # zero-copy for default row-major layout
    out2d = _pallas_scale_2d(x2d, scale2d, tm, n_lane)
    return out2d.reshape(x.shape)


if __name__ == "__main__":
    key = jax.random.PRNGKey(0)
    k0, k1, k2 = jax.random.split(key, 3)

    # Small NCHW activation (batch=2, channels=4, 16x16 spatial), mirroring
    # __init__(init_lambda=1). Force the Pallas path for a tiny tensor so the
    # kernel itself is exercised.
    x = jax.random.normal(k0, (2, 4, 16, 16), dtype=jnp.float32)
    init_lambda = 1.0

    y = jax.block_until_ready(lambda_layer(x, init_lambda, base=1, min_pallas_elems=0))
    assert y.shape == x.shape and y.dtype == x.dtype
    assert jnp.allclose(y, x * init_lambda, atol=1e-6, rtol=1e-6)

    # base != 1 branch (x * base**l), still on the kernel path.
    y2 = jax.block_until_ready(lambda_layer(x, 0.5, base=2, min_pallas_elems=0))
    assert jnp.allclose(y2, x * (2.0 ** 0.5), atol=1e-6, rtol=1e-6)

    # Default-threshold kernel path with a ragged row grid (partial last block
    # exercised: 544 rows tiled in blocks of 160 -> masked boundary stores).
    x3 = jax.random.normal(k1, (2, 4, 136, 256), dtype=jnp.float32)
    y3 = jax.block_until_ready(
        lambda_layer(x3, 2.5, base=1, min_pallas_elems=_DEFAULT_MIN_ELEMS)
    )
    assert y3.shape == x3.shape
    assert jnp.allclose(y3, x3 * 2.5, atol=1e-6, rtol=1e-6)

    # Element count not divisible by 128 -> plain-JAX fallback, same semantics.
    x4 = jax.random.normal(k2, (2, 3, 7, 7), dtype=jnp.float32)
    y4 = jax.block_until_ready(
        lambda_layer(x4, -1.5, base=1, min_pallas_elems=_DEFAULT_MIN_ELEMS)
    )
    assert y4.shape == x4.shape
    assert jnp.allclose(y4, x4 * -1.5, atol=1e-6, rtol=1e-6)

    print("KERNEL_OK")
</pallas_src>

<mosaic_0001>
module attributes {stable_mosaic.version = 11 : i64} {
  func.func @_lambda_scale_kernel(%arg0: i32, %arg1: memref<1x1xf32, #tpu.memory_space<smem>>, %arg2: memref<4x512xf32, #tpu.memory_space<vmem>>, %arg3: memref<4x512xf32, #tpu.memory_space<vmem>>) attributes {dimension_semantics = [#tpu.dimension_semantics<parallel>], iteration_bounds = array<i64: 1>, scalar_prefetch = 0 : i64, scratch_operands = 0 : i64, tpu.core_type = #tpu.core_type<tc>, window_params = [{transform_indices = @transform_0, window_bounds = array<i64: 1, 1>}, {transform_indices = @transform_1, window_bounds = array<i64: 4, 512>}, {transform_indices = @transform_2, window_bounds = array<i64: 4, 512>}]} {
    %c0 = arith.constant 0 : index
    %c0_0 = arith.constant 0 : index
    %0 = memref.load %arg1[%c0, %c0_0] : memref<1x1xf32, #tpu.memory_space<smem>>
    %c0_1 = arith.constant 0 : index
    %c0_2 = arith.constant 0 : index
    %1 = vector.load %arg2[%c0_1, %c0_2] : memref<4x512xf32, #tpu.memory_space<vmem>>, vector<4x512xf32>
    %2 = vector.broadcast %0 : f32 to vector<4x512xf32>
    %3 = arith.mulf %1, %2 : vector<4x512xf32>
    %c0_3 = arith.constant 0 : index
    %c0_4 = arith.constant 0 : index
    %4 = vector.load %arg3[%c0_3, %c0_4] : memref<4x512xf32, #tpu.memory_space<vmem>>, vector<4x512xf32>
    tpu.vector_store %arg3[%c0_3, %c0_4], %3 {strides = array<i32>} : memref<4x512xf32, #tpu.memory_space<vmem>>, vector<4x512xf32>,
    return
  }
  func.func @transform_0(%arg0: i32) -> (i32, i32) {
    %c0_i32 = arith.constant 0 : i32
    %c0_i32_0 = arith.constant 0 : i32
    %c0_i32_1 = arith.constant 0 : i32
    return %c0_i32, %c0_i32_0 : i32, i32
  }
  func.func @transform_1(%arg0: i32) -> (i32, i32) {
    %c0_i32 = arith.constant 0 : i32
    %c0_i32_0 = arith.constant 0 : i32
    return %arg0, %c0_i32 : i32, i32
  }
  func.func @transform_2(%arg0: i32) -> (i32, i32) {
    %c0_i32 = arith.constant 0 : i32
    %c0_i32_0 = arith.constant 0 : i32
    return %arg0, %c0_i32 : i32, i32
  }
}

</mosaic_0001>

<bundles_post_ra>
// kernel: lambda_layer.1
= control target key start
LH: loop header
LB: loop body
LE: loop exit
PB: predicated region body
PF: predicated region fallthrough
CT: control target
= control target key end

     0   :  { %s54_s0 = inlined_call_operand.<no memory space> [shape: f32[1,1], index: 0, kind: input, shape index: {}]   ;;  %s55_s1 = inlined_call_operand.vmem [shape: f32[4,512], index: 1, kind: input, shape index: {}]   ;;  %s56_s2 = inlined_call_operand.vmem [shape: f32[4,512], index: 2, kind: output, shape index: {}]  }
   0x1   :  { %v13_v0 = vld [vmem:[%s55_s1] sm:$0xff]  ;;  %v15_v1 = vstv %s54_s0  ;;  %v14_v2 = vld [vmem:[%s55_s1 + $0x8] sm:$0xff] }
   0x2   :  { %v16_v3 = vmul.f32 %v15_v1, %v13_v0  ;;  %v17_v4 = vmul.f32 %v15_v1, %v14_v2 }
   0x4   :  { %18 = vst [vmem:[%s56_s2] sm:$0xff] %v16_v3 }
   0x5   :  { %19 = vst [vmem:[%s56_s2 + $0x8] sm:$0xff] %v17_v4 }

</bundles_post_ra>
